<compile_context>
chip_gen: v6e
topology: v6e:2x2x1
jax: 0.10.0
libtpu: 0.0.40
codegen_flags: <defaults>
</compile_context>

<pallas_src>
import jax
import jax.numpy as jnp
from jax.experimental import pallas as pl
from jax.experimental.pallas import tpu as pltpu


def _round_up(x, m):
    return (x + m - 1) // m * m


def _decoder_kernel(a_ref, l_ref, wa_ref, wl_ref, b1_ref, w2_ref, bout_ref, o_ref):
    # a/l: (tm, F) input rows (HBM dtype); wa/wl: (F, H+O) = [W1|Ws] split on K;
    # b1: (1, H) f32; w2: (H, O); bout: (1, O) f32 (= b2 + bs); o: (tm, O).
    cdt = wa_ref.dtype
    a = a_ref[...].astype(cdt)          # in-kernel cast (free on VPU)
    l = l_ref[...].astype(cdt)

    # x @ [W1 | Ws]  ==  a @ W_top + l @ W_bot   (no in-VMEM concat copy)
    xw = (jnp.dot(a, wa_ref[...], preferred_element_type=jnp.float32)
          + jnp.dot(l, wl_ref[...], preferred_element_type=jnp.float32))

    hidden = b1_ref.shape[-1]
    h = jnp.maximum(xw[:, :hidden] + b1_ref[...], 0.0)          # ReLU, f32
    s = xw[:, hidden:]                                          # shortcut, f32

    y = jnp.dot(h.astype(w2_ref.dtype), w2_ref[...],
                preferred_element_type=jnp.float32)

    o_ref[...] = (y + s + bout_ref[...]).astype(o_ref.dtype)


def pack_decoder_params(params, compute_dtype=jnp.bfloat16):
    """One-time weight packing; hoisted out of the per-call hot path."""
    compute_dtype = jnp.dtype(compute_dtype)
    w1, b1 = params["w1"], params["b1"]          # (2F, H), (1, H)
    w2, b2 = params["w2"], params["b2"]          # (H, O), (1, O)
    ws, bs = params["ws"], params["bs"]          # (2F, O), (1, O)
    F = w1.shape[0] // 2
    wcat = jnp.concatenate([w1, ws], axis=1).astype(compute_dtype)   # (2F, H+O)
    return {
        "wa": wcat[:F],                          # audio half of the concat K
        "wl": wcat[F:],                          # landmark half
        "b1": b1.astype(jnp.float32),
        "w2": w2.astype(compute_dtype),
        "bout": (b2 + bs).astype(jnp.float32),   # fold shortcut bias into b2
    }


def landmark_decoder_forward(audio_feature, landmark_feature, packed, *,
                             tm=None, out_dtype=None):
    """audio/landmark: (B, T, F). Returns (B, T, O//2, 2)."""
    assert audio_feature.shape == landmark_feature.shape, (
        "audio_feature and landmark_feature must have the same shape")
    B, T, F = audio_feature.shape
    M = B * T

    wa, wl = packed["wa"], packed["wl"]
    b1, w2, bout = packed["b1"], packed["w2"], packed["bout"]
    H = b1.shape[-1]
    O = w2.shape[-1]
    HO = H + O
    compute_dtype = jnp.dtype(wa.dtype)

    in_dtype = jnp.dtype(audio_feature.dtype)
    out_dtype = jnp.dtype(out_dtype) if out_dtype is not None else in_dtype

    # Flatten rows — metadata-only reshape, no HBM pass, no pad, no astype.
    a2 = audio_feature.reshape(M, F)
    l2 = landmark_feature.reshape(M, F)

    # ---- row tile selection ---------------------------------------------------
    bf16ish = (compute_dtype.itemsize < 4 or out_dtype.itemsize < 4
               or in_dtype.itemsize < 4)
    row_align = 16 if bf16ish else 8
    if tm is None:
        tm = 2048 if compute_dtype == jnp.dtype(jnp.bfloat16) else 1024
    tm_eff = _round_up(max(1, min(tm, M)), row_align)
    # Prefer >= 2 grid steps so the "parallel" axis spans both v7x TensorCores.
    if M >= 2 * row_align and pl.cdiv(M, tm_eff) < 2:
        tm_eff = _round_up(pl.cdiv(M, 2), row_align)
    grid = (pl.cdiv(M, tm_eff),)          # ragged last block handled by Pallas

    # ---- cost estimate + generation-aware VMEM budget ---------------------------
    in_sz, c_sz, out_sz = in_dtype.itemsize, compute_dtype.itemsize, out_dtype.itemsize
    flops = 2 * M * (2 * F * HO + H * O)
    bytes_accessed = (2 * M * F * in_sz + M * O * out_sz
                      + 2 * F * HO * c_sz + H * O * c_sz + (H + O) * 4)
    cost = pl.CostEstimate(flops=flops, transcendentals=0,
                           bytes_accessed=bytes_accessed)

    vmem_est = (2 * 2 * tm_eff * F * in_sz        # double-buffered input rows
                + 2 * tm_eff * O * out_sz         # double-buffered output rows
                + 2 * F * HO * c_sz               # resident wa + wl
                + H * O * c_sz + (H + O) * 4      # resident w2 + biases
                + 3 * tm_eff * HO * 4)            # f32 intermediates headroom
    cp_kwargs = dict(dimension_semantics=("parallel",))
    if vmem_est > (16 << 20):
        try:
            phys_vmem = getattr(pltpu.get_tpu_info(), "vmem_capacity_bytes",
                                64 << 20)
        except Exception:  # pragma: no cover - defensive
            phys_vmem = 64 << 20
        # <= ~48 MiB on v7x (64 MiB physical), <= 96 MiB on v5e/v6e (128 MiB).
        cap = min(int(phys_vmem) * 3 // 4, 96 << 20)
        cp_kwargs["vmem_limit_bytes"] = int(max(16 << 20, min(2 * vmem_est, cap)))

    full = lambda r, c: pl.BlockSpec((r, c), lambda i: (0, 0))   # resident weights

    out = pl.pallas_call(
        _decoder_kernel,
        out_shape=jax.ShapeDtypeStruct((M, O), out_dtype),
        grid_spec=pl.GridSpec(
            grid=grid,
            in_specs=[
                pl.BlockSpec((tm_eff, F), lambda i: (i, 0)),     # audio rows
                pl.BlockSpec((tm_eff, F), lambda i: (i, 0)),     # landmark rows
                full(F, HO),                                     # Wa = Wcat[:F]
                full(F, HO),                                     # Wl = Wcat[F:]
                full(1, H),                                      # b1
                full(H, O),                                      # W2
                full(1, O),                                      # b2 + bs
            ],
            out_specs=pl.BlockSpec((tm_eff, O), lambda i: (i, 0)),
        ),
        compiler_params=pltpu.CompilerParams(**cp_kwargs),
        cost_estimate=cost,
    )(a2, l2, wa, wl, b1, w2, bout)
    # TODO(synk): optionally set pipeline_mode=pl.Buffered(3) on the two row
    # inputs if xprof shows exposed input DMA at very large tm (measure-gated).

    return out.reshape(B, T, O // 2, 2)


def init_params(key, input_dim=128 * 2, hidden_dim=128, output_dim=131 * 2):
    """Deterministic synthetic parameters (stored as (in, out) matrices)."""
    ks = jax.random.split(key, 6)
    s1 = 1.0 / jnp.sqrt(input_dim)
    s2 = 1.0 / jnp.sqrt(hidden_dim)
    return {
        "w1": jax.random.uniform(ks[0], (input_dim, hidden_dim), jnp.float32, -s1, s1),
        "b1": jax.random.uniform(ks[1], (1, hidden_dim), jnp.float32, -s1, s1),
        "w2": jax.random.uniform(ks[2], (hidden_dim, output_dim), jnp.float32, -s2, s2),
        "b2": jax.random.uniform(ks[3], (1, output_dim), jnp.float32, -s2, s2),
        "ws": jax.random.uniform(ks[4], (input_dim, output_dim), jnp.float32, -s1, s1),
        "bs": jax.random.uniform(ks[5], (1, output_dim), jnp.float32, -s1, s1),
    }


def _reference(audio, landmark, params):
    """Plain-JAX reference mirroring the PyTorch forward."""
    x = jnp.concatenate([audio, landmark], axis=-1)
    h = jnp.maximum(x @ params["w1"] + params["b1"][0], 0.0)
    y = h @ params["w2"] + params["b2"][0]
    s = x @ params["ws"] + params["bs"][0]
    out = y + s
    return out.reshape(out.shape[0], out.shape[1], -1, 2)


if __name__ == "__main__":
    key = jax.random.PRNGKey(0)
    kp, ka, kl = jax.random.split(key, 3)

    B, T, F = 2, 8, 128                    # input_dim = 2 * F = 256 (module default)
    params = init_params(kp, input_dim=2 * F, hidden_dim=128, output_dim=131 * 2)

    audio = jax.random.normal(ka, (B, T, F), jnp.float32)
    landmark = jax.random.normal(kl, (B, T, F), jnp.float32)

    ref = _reference(audio, landmark, params)

    # f32 compute path (close match to reference)
    packed_f32 = pack_decoder_params(params, compute_dtype=jnp.float32)
    out = jax.block_until_ready(landmark_decoder_forward(audio, landmark, packed_f32))
    assert out.shape == (B, T, 131, 2), out.shape
    assert jnp.allclose(out, ref, atol=1e-3, rtol=1e-3), "f32 mismatch vs reference"

    # bf16 compute path (v6e/v7x/v5e MXU rate), in-kernel cast, f32 accumulation
    packed_bf16 = pack_decoder_params(params, compute_dtype=jnp.bfloat16)
    out_bf16 = jax.block_until_ready(
        landmark_decoder_forward(audio, landmark, packed_bf16))
    assert out_bf16.shape == (B, T, 131, 2)
    assert jnp.allclose(out_bf16, ref, atol=5e-2, rtol=5e-2), "bf16 mismatch vs reference"

    # Ragged rows (M not a multiple of the row tile) + bf16 output stream.
    B2, T2 = 2, 9
    audio2 = jax.random.normal(jax.random.PRNGKey(1), (B2, T2, F), jnp.float32)
    landmark2 = jax.random.normal(jax.random.PRNGKey(2), (B2, T2, F), jnp.float32)
    ref2 = _reference(audio2, landmark2, params)
    out2 = jax.block_until_ready(
        landmark_decoder_forward(audio2, landmark2, packed_bf16, tm=16,
                                 out_dtype=jnp.bfloat16))
    assert out2.shape == (B2, T2, 131, 2)
    assert jnp.allclose(out2.astype(jnp.float32), ref2, atol=5e-2, rtol=5e-2), (
        "ragged/bf16-output mismatch vs reference")

    print("KERNEL_OK")
</pallas_src>

<mosaic_0001>
module attributes {stable_mosaic.version = 11 : i64} {
  func.func @_decoder_kernel(%arg0: i32, %arg1: memref<8x128xf32, #tpu.memory_space<vmem>>, %arg2: memref<8x128xf32, #tpu.memory_space<vmem>>, %arg3: memref<128x390xf32, #tpu.memory_space<vmem>>, %arg4: memref<128x390xf32, #tpu.memory_space<vmem>>, %arg5: memref<1x128xf32, #tpu.memory_space<vmem>>, %arg6: memref<128x262xf32, #tpu.memory_space<vmem>>, %arg7: memref<1x262xf32, #tpu.memory_space<vmem>>, %arg8: memref<8x262xf32, #tpu.memory_space<vmem>>) attributes {dimension_semantics = [#tpu.dimension_semantics<parallel>], iteration_bounds = array<i64: 2>, scalar_prefetch = 0 : i64, scratch_operands = 0 : i64, tpu.core_type = #tpu.core_type<tc>, window_params = [{transform_indices = @transform_0, window_bounds = array<i64: 8, 128>}, {transform_indices = @transform_1, window_bounds = array<i64: 8, 128>}, {pipeline_mode = #tpu.pipeline_mode<synchronous>, transform_indices = @transform_2, window_bounds = array<i64: 128, 390>}, {pipeline_mode = #tpu.pipeline_mode<synchronous>, transform_indices = @transform_3, window_bounds = array<i64: 128, 390>}, {pipeline_mode = #tpu.pipeline_mode<synchronous>, transform_indices = @transform_4, window_bounds = array<i64: 1, 128>}, {pipeline_mode = #tpu.pipeline_mode<synchronous>, transform_indices = @transform_5, window_bounds = array<i64: 128, 262>}, {pipeline_mode = #tpu.pipeline_mode<synchronous>, transform_indices = @transform_6, window_bounds = array<i64: 1, 262>}, {transform_indices = @transform_7, window_bounds = array<i64: 8, 262>}]} {
    %c0 = arith.constant 0 : index
    %c0_0 = arith.constant 0 : index
    %0 = vector.load %arg1[%c0, %c0_0] : memref<8x128xf32, #tpu.memory_space<vmem>>, vector<8x128xf32>
    %c0_1 = arith.constant 0 : index
    %c0_2 = arith.constant 0 : index
    %1 = vector.load %arg2[%c0_1, %c0_2] : memref<8x128xf32, #tpu.memory_space<vmem>>, vector<8x128xf32>
    %c0_3 = arith.constant 0 : index
    %c0_4 = arith.constant 0 : index
    %2 = vector.load %arg3[%c0_3, %c0_4] : memref<128x390xf32, #tpu.memory_space<vmem>>, vector<128x390xf32>
    %cst = arith.constant dense<0.000000e+00> : vector<8x390xf32>
    %3 = tpu.matmul %0, %2, %cst {dimension_numbers = #tpu.dot_dimension_numbers<[1], [0], [0], [1], [0, 0, 1, 1], [], []>} : vector<8x128xf32>, vector<128x390xf32>, vector<8x390xf32> -> vector<8x390xf32>
    %c0_5 = arith.constant 0 : index
    %c0_6 = arith.constant 0 : index
    %4 = vector.load %arg4[%c0_5, %c0_6] : memref<128x390xf32, #tpu.memory_space<vmem>>, vector<128x390xf32>
    %cst_7 = arith.constant dense<0.000000e+00> : vector<8x390xf32>
    %5 = tpu.matmul %1, %4, %cst_7 {dimension_numbers = #tpu.dot_dimension_numbers<[1], [0], [0], [1], [0, 0, 1, 1], [], []>} : vector<8x128xf32>, vector<128x390xf32>, vector<8x390xf32> -> vector<8x390xf32>
    %6 = arith.addf %3, %5 : vector<8x390xf32>
    %7 = vector.extract_strided_slice %6 {offsets = [0, 0], sizes = [8, 128], strides = [1, 1]} : vector<8x390xf32> to vector<8x128xf32>
    %c0_8 = arith.constant 0 : index
    %c0_9 = arith.constant 0 : index
    %8 = vector.load %arg5[%c0_8, %c0_9] : memref<1x128xf32, #tpu.memory_space<vmem>>, vector<1x128xf32>
    %9 = vector.broadcast %8 : vector<1x128xf32> to vector<8x128xf32>
    %10 = arith.addf %7, %9 : vector<8x128xf32>
    %cst_10 = arith.constant 0.000000e+00 : f32
    %11 = vector.broadcast %cst_10 : f32 to vector<8x128xf32>
    %12 = arith.maximumf %10, %11 : vector<8x128xf32>
    %13 = vector.extract_strided_slice %6 {offsets = [0, 128], sizes = [8, 262], strides = [1, 1]} : vector<8x390xf32> to vector<8x262xf32>
    %c0_11 = arith.constant 0 : index
    %c0_12 = arith.constant 0 : index
    %14 = vector.load %arg6[%c0_11, %c0_12] : memref<128x262xf32, #tpu.memory_space<vmem>>, vector<128x262xf32>
    %cst_13 = arith.constant dense<0.000000e+00> : vector<8x262xf32>
    %15 = tpu.matmul %12, %14, %cst_13 {dimension_numbers = #tpu.dot_dimension_numbers<[1], [0], [0], [1], [0, 0, 1, 1], [], []>} : vector<8x128xf32>, vector<128x262xf32>, vector<8x262xf32> -> vector<8x262xf32>
    %16 = arith.addf %15, %13 : vector<8x262xf32>
    %c0_14 = arith.constant 0 : index
    %c0_15 = arith.constant 0 : index
    %17 = vector.load %arg7[%c0_14, %c0_15] : memref<1x262xf32, #tpu.memory_space<vmem>>, vector<1x262xf32>
    %18 = vector.broadcast %17 : vector<1x262xf32> to vector<8x262xf32>
    %19 = arith.addf %16, %18 : vector<8x262xf32>
    %c0_16 = arith.constant 0 : index
    %c0_17 = arith.constant 0 : index
    %20 = vector.load %arg8[%c0_16, %c0_17] : memref<8x262xf32, #tpu.memory_space<vmem>>, vector<8x262xf32>
    tpu.vector_store %arg8[%c0_16, %c0_17], %19 {strides = array<i32>} : memref<8x262xf32, #tpu.memory_space<vmem>>, vector<8x262xf32>,
    return
  }
  func.func @transform_0(%arg0: i32) -> (i32, i32) {
    %c0_i32 = arith.constant 0 : i32
    %c0_i32_0 = arith.constant 0 : i32
    return %arg0, %c0_i32 : i32, i32
  }
  func.func @transform_1(%arg0: i32) -> (i32, i32) {
    %c0_i32 = arith.constant 0 : i32
    %c0_i32_0 = arith.constant 0 : i32
    return %arg0, %c0_i32 : i32, i32
  }
  func.func @transform_2(%arg0: i32) -> (i32, i32) {
    %c0_i32 = arith.constant 0 : i32
    %c0_i32_0 = arith.constant 0 : i32
    %c0_i32_1 = arith.constant 0 : i32
    return %c0_i32, %c0_i32_0 : i32, i32
  }
  func.func @transform_3(%arg0: i32) -> (i32, i32) {
    %c0_i32 = arith.constant 0 : i32
    %c0_i32_0 = arith.constant 0 : i32
    %c0_i32_1 = arith.constant 0 : i32
    return %c0_i32, %c0_i32_0 : i32, i32
  }
  func.func @transform_4(%arg0: i32) -> (i32, i32) {
    %c0_i32 = arith.constant 0 : i32
    %c0_i32_0 = arith.constant 0 : i32
    %c0_i32_1 = arith.constant 0 : i32
    return %c0_i32, %c0_i32_0 : i32, i32
  }
  func.func @transform_5(%arg0: i32) -> (i32, i32) {
    %c0_i32 = arith.constant 0 : i32
    %c0_i32_0 = arith.constant 0 : i32
    %c0_i32_1 = arith.constant 0 : i32
    return %c0_i32, %c0_i32_0 : i32, i32
  }
  func.func @transform_6(%arg0: i32) -> (i32, i32) {
    %c0_i32 = arith.constant 0 : i32
    %c0_i32_0 = arith.constant 0 : i32
    %c0_i32_1 = arith.constant 0 : i32
    return %c0_i32, %c0_i32_0 : i32, i32
  }
  func.func @transform_7(%arg0: i32) -> (i32, i32) {
    %c0_i32 = arith.constant 0 : i32
    %c0_i32_0 = arith.constant 0 : i32
    return %arg0, %c0_i32 : i32, i32
  }
}

</mosaic_0001>

<bundles_post_ra>
// kernel: tpu_custom_call.1
= control target key start
LH: loop header
LB: loop body
LE: loop exit
PB: predicated region body
PF: predicated region fallthrough
CT: control target
= control target key end

     0   :  { %12 = vsyncpa [#allocation3], 0  ;;  %s1884_s0 = inlined_call_operand.vmem [shape: f32[16,128], index: 0, kind: input, shape index: {}]   ;;  %s1885_s1 = inlined_call_operand.vmem [shape: f32[16,128], index: 1, kind: input, shape index: {}]   ;;  %s1886_s2 = inlined_call_operand.vmem [shape: f32[128,390], index: 2, kind: input, shape index: {}]   ;;  %s1887_s3 = inlined_call_operand.vmem [shape: f32[128,390], index: 3, kind: input, shape index: {}]   ;;  %s1888_s4 = inlined_call_operand.vmem [shape: f32[1,128], index: 4, kind: input, shape index: {}]   ;;  %s1889_s5 = inlined_call_operand.vmem [shape: f32[128,262], index: 5, kind: input, shape index: {}]   ;;  %s1890_s6 = inlined_call_operand.vmem [shape: f32[1,262], index: 6, kind: input, shape index: {}]   ;;  %s1891_s7 = inlined_call_operand.hbm [shape: f32[16,262], index: 7, kind: output, shape index: {}]  }
   0x1   :  { %14 = vsyncpa [#allocation3 + $0x1], 0  ;;  %s1223_s24 = smov 0   ;;  %s1225_s25 = smov 0  }
   0x2   :  { %s1227_s26 = smov 0   ;;  %s1229_s27 = smov 0  }
   0x3 LB: > { %s1244_s28 = sadd.s32 4294967295, %s1178_s27   ;;  %s1013_s29 = sadd.s32 4294967294, %s1178_s27   ;;  %s1178_s27 = sphi %s1229_s27, %s1897_s27   ;;  %s1174_s26 = sphi %s1227_s26, %s1896_s26   ;;  %s1170_s25 = sphi %s1225_s25, %s1895_s25   ;;  %s1166_s24 = sphi %s1223_s24, %s1894_s24  }
   0x4   : > { %s1248_s30 = sadd.s32 1, %s1178_s27   ;;  %s184_s8 = sadd.s32 1, %s1174_s26 }
   0x5   : > { %s181_s9 = ssub.s32 %s1178_s27, %s1248_s30  ;;  %p194_p0 = scmp.ne.s32.totalorder %s1174_s26, %s1170_s25 }
   0x6   : > { %p182_p1 = scmp.eq.s32.totalorder %s181_s9, 0  ;;  %p195_p2 = scmp.eq.s32.totalorder %s1244_s28, 1 }
   0x7   : > { %p200_p3 = scmp.ne.s32.totalorder %s1170_s25, %s1166_s24  ;;  %p201_p4 = scmp.eq.s32.totalorder %s1013_s29, 1 }
   0x8   : > { %s1259_s10 = scalar_select %p182_p1, %s1174_s26, %s184_s8  }
   0x9   : > { %p1261_p5 = por %p195_p2, %p194_p0  ;;  %p1265_p6 = por %p201_p4, %p200_p3 }
   0xa   : > { %p1016_p7 = scmp.ge.s32.totalorder %s1178_s27, 1  ;;  %p248_p8 = scmp.lt.s32.totalorder %s1178_s27, 3 }
   0xc   : > { %p249_p9 = pnand %p1016_p7, %p248_p8 }
   0xd   : > { %p283_p10 = scmp.lt.s32.totalorder (!%p249_p9), %s1244_s28, 1  ;;  %s280_s22 = sand.u32 (!%p249_p9), 1, %s1170_s25  }
   0xe   : > { %252 = sbr.rel (%p249_p9) target bundleno = 495 (0x1ef), region = 48  ;;  %s1182_s19 = smov (!%p249_p9), [#allocation2]  }
   0xf   : > { %s1075_s23 = smul.u32 (!%p249_p9), 24, %s280_s22 }
  0x11   : > { %s282_s9 = scalar_lea.vmem (!%p249_p9), [#allocation2], %s1075_s23 }
  0x12   : > { %s942_s13 = sshll.u32 (!%p249_p9), %s282_s9, 4  ;;  %s943_s13 = int_to_ptr.vmem [resolvable:$true] %s942_s13 }
  0x13   : > { %v418_v0 = vld [vmem:[%s1887_s3 + $0x1e8] sm:$0xff]  ;;  %v417_v1 = vld [vmem:[%s1887_s3 + $0x1e0] sm:$0xff]  ;;  %v1180_v4 = vmov 0.0   ;;  %s1344_s17 = scalar_select %p283_p10, %s1244_s28, 1  ;;  %v420_v26 = vld [vmem:[%s1887_s3 + $0x1f8] sm:$0xff]  ;;  %vm1181_vm0 = vmmov 0  }
  0x14   : > { %v414_v2 = vld [vmem:[%s1887_s3 + $0x1c8] sm:$0xff]  ;;  %421 = vmatprep.subr.mxu0 %v418_v0  ;;  %v413_v3 = vld [vmem:[%s1887_s3 + $0x1c0] sm:$0xff]  ;;  %485 = vmatprep.mubr.f32.mxu0 %v1180_v4  ;;  %v419_v27 = vld [vmem:[%s1887_s3 + $0x1f0] sm:$0xff]  ;;  %vm925_vm1 = vcmask 48128   ;;  %s1118_s18 = scalar_lea.vmem %s943_s13, 384 }
  0x15   : > { %422 = vmatpush1.msra.mxu0 %v417_v1  ;;  %v410_v5 = vld [vmem:[%s1887_s3 + $0x1a8] sm:$0xff]  ;;  %556 = vmatprep.mubr.f32.mxu1 %v1180_v4  ;;  %v409_v6 = vld [vmem:[%s1887_s3 + $0x1a0] sm:$0xff]  ;;  %v416_v28 = vld [vmem:[%s1887_s3 + $0x1d8] sm:$0xff]  ;;  %s1017_s21 = sshll.u32 %s1344_s17, 3  ;;  %p1119_p11 = scmp.ne.s32.totalorder %s943_s13, %s1118_s18 }
  0x16   : > { %423 = vmatprep.subr.mxu0 %v414_v2  ;;  %v406_v7 = vld [vmem:[%s1887_s3 + $0x188] sm:$0xff]  ;;  %v405_v8 = vld [vmem:[%s1887_s3 + $0x180] sm:$0xff]  ;;  %492 = vmatprep.subr.mxu1 %v420_v26  ;;  %v415_v30 = vld [vmem:[%s1887_s3 + $0x1d0] sm:$0xff]  ;;  %s290_s29 = scalar_lea.vmem %s1885_s1, %s1017_s21  ;;  %s286_s16 = scalar_lea.vmem %s1884_s0, %s1017_s21 }
  0x17   : > { %424 = vmatpush1.msra.mxu0 %v413_v3  ;;  %v402_v9 = vld [vmem:[%s1887_s3 + $0x168] sm:$0xff]  ;;  %v401_v10 = vld [vmem:[%s1887_s3 + $0x160] sm:$0xff]  ;;  %493 = vmatpush1.msra.mxu1 %v419_v27  ;;  %v412_v32 = vld [vmem:[%s1887_s3 + $0x1b8] sm:$0xff]  ;;  %s1076_s21 = smul.u32 384, %s1244_s28  ;;  %s928_s28 = scalar_lea.sflag [#allocation3], %s280_s22 }
  0x18   : > { %425 = vmatprep.subr.mxu0 %v410_v5  ;;  %v398_v11 = vld [vmem:[%s1887_s3 + $0x148] sm:$0xff]  ;;  %v397_v12 = vld [vmem:[%s1887_s3 + $0x140] sm:$0xff]  ;;  %494 = vmatprep.subr.mxu1 %v416_v28  ;;  %v411_v34 = vld [vmem:[%s1887_s3 + $0x1b0] sm:$0xff]  ;;  %p1120_p12 = pnand %p1119_p11, %p1261_p5 }
  0x19   : > { %426 = vmatpush1.msra.mxu0 %v409_v6  ;;  %v394_v13 = vld [vmem:[%s1887_s3 + $0x128] sm:$0xff]  ;;  %v393_v14 = vld [vmem:[%s1887_s3 + $0x120] sm:$0xff]  ;;  %495 = vmatpush1.msra.mxu1 %v415_v30  ;;  %v408_v36 = vld [vmem:[%s1887_s3 + $0x198] sm:$0xff] }
  0x1a   : > { %427 = vmatprep.subr.mxu0 %v406_v7  ;;  %v390_v15 = vld [vmem:[%s1887_s3 + $0x108] sm:$0xff]  ;;  %v389_v16 = vld [vmem:[%s1887_s3 + $0x100] sm:$0xff]  ;;  %496 = vmatprep.subr.mxu1 %v412_v32  ;;  %v407_v38 = vld [vmem:[%s1887_s3 + $0x190] sm:$0xff]  ;;  %p1121_p13 = pneg %p1120_p12 }
  0x1b   : > { %428 = vmatpush1.msra.mxu0 %v405_v8  ;;  %v386_v17 = vld [vmem:[%s1887_s3 + $0xe8] sm:$0xff]  ;;  %v385_v18 = vld [vmem:[%s1887_s3 + $0xe0] sm:$0xff]  ;;  %497 = vmatpush1.msra.mxu1 %v411_v34  ;;  %v404_v40 = vld [vmem:[%s1887_s3 + $0x178] sm:$0xff] }
  0x1c   : > { %429 = vmatprep.subr.mxu0 %v402_v9  ;;  %v382_v19 = vld [vmem:[%s1887_s3 + $0xc8] sm:$0xff]  ;;  %v381_v20 = vld [vmem:[%s1887_s3 + $0xc0] sm:$0xff]  ;;  %498 = vmatprep.subr.mxu1 %v408_v36  ;;  %v403_v42 = vld [vmem:[%s1887_s3 + $0x170] sm:$0xff] }
  0x1d   : > { %430 = vmatpush1.msra.mxu0 %v401_v10  ;;  %v378_v21 = vld [vmem:[%s1887_s3 + $0xa8] sm:$0xff]  ;;  %v377_v22 = vld [vmem:[%s1887_s3 + $0xa0] sm:$0xff]  ;;  %499 = vmatpush1.msra.mxu1 %v407_v38  ;;  %v400_v47 = vld [vmem:[%s1887_s3 + $0x158] sm:$0xff] }
  0x1e   : > { %431 = vmatprep.subr.mxu0 %v398_v11  ;;  %v374_v23 = vld [vmem:[%s1887_s3 + $0x88] sm:$0xff]  ;;  %v373_v24 = vld [vmem:[%s1887_s3 + $0x80] sm:$0xff]  ;;  %500 = vmatprep.subr.mxu1 %v404_v40  ;;  %v399_v49 = vld [vmem:[%s1887_s3 + $0x150] sm:$0xff] }
  0x1f   : > { %432 = vmatpush1.msra.mxu0 %v397_v12  ;;  %v370_v25 = vld [vmem:[%s1887_s3 + $0x68] sm:$0xff]  ;;  %v369_v29 = vld [vmem:[%s1887_s3 + $0x60] sm:$0xff]  ;;  %501 = vmatpush1.msra.mxu1 %v403_v42  ;;  %v396_v51 = vld [vmem:[%s1887_s3 + $0x138] sm:$0xff] }
  0x20   : > { %433 = vmatprep.subr.mxu0 %v394_v13  ;;  %v366_v31 = vld [vmem:[%s1887_s3 + $0x48] sm:$0xff]  ;;  %v365_v33 = vld [vmem:[%s1887_s3 + $0x40] sm:$0xff]  ;;  %502 = vmatprep.subr.mxu1 %v400_v47  ;;  %v395_v53 = vld [vmem:[%s1887_s3 + $0x130] sm:$0xff] }
  0x21   : > { %434 = vmatpush1.msra.mxu0 %v393_v14  ;;  %v362_v35 = vld [vmem:[%s1887_s3 + $0x28] sm:$0xff]  ;;  %v361_v37 = vld [vmem:[%s1887_s3 + $0x20] sm:$0xff]  ;;  %503 = vmatpush1.msra.mxu1 %v399_v49  ;;  %v392_v55 = vld [vmem:[%s1887_s3 + $0x118] sm:$0xff] }
  0x22   : > { %435 = vmatprep.subr.mxu0 %v390_v15  ;;  %v358_v39 = vld [vmem:[%s1887_s3 + $0x8] sm:$0xff]  ;;  %v357_v41 = vld [vmem:[%s1887_s3] sm:$0xff]  ;;  %504 = vmatprep.subr.mxu1 %v396_v51  ;;  %v391_v57 = vld [vmem:[%s1887_s3 + $0x110] sm:$0xff] }
  0x23   : > { %436 = vmatpush1.msra.mxu0 %v389_v16  ;;  %v1409_v43 = vld [vmem:[%s290_s29] sm:$0xff]  ;;  %v354_v44 = vld [vmem:[%s1886_s2 + $0x1e8] sm:$0xff]  ;;  %505 = vmatpush1.msra.mxu1 %v395_v53  ;;  %v388_v59 = vld [vmem:[%s1887_s3 + $0xf8] sm:$0xff]  ;;  %s940_s29 = scalar_lea.hbm %s1891_s7, %s1076_s21 }
  0x24   : > { %437 = vmatprep.subr.mxu0 %v386_v17  ;;  %v353_v45 = vld [vmem:[%s1886_s2 + $0x1e0] sm:$0xff]  ;;  %v350_v46 = vld [vmem:[%s1886_s2 + $0x1c8] sm:$0xff]  ;;  %506 = vmatprep.subr.mxu1 %v392_v55  ;;  %v387_v61 = vld [vmem:[%s1887_s3 + $0xf0] sm:$0xff] }
  0x25   : > { %438 = vmatpush1.msra.mxu0 %v385_v18  ;;  %v349_v48 = vld [vmem:[%s1886_s2 + $0x1c0] sm:$0xff]  ;;  %v346_v50 = vld [vmem:[%s1886_s2 + $0x1a8] sm:$0xff]  ;;  %507 = vmatpush1.msra.mxu1 %v391_v57  ;;  %v384_v63 = vld [vmem:[%s1887_s3 + $0xd8] sm:$0xff] }
  0x26   : > { %439 = vmatprep.subr.mxu0 %v382_v19  ;;  %v345_v52 = vld [vmem:[%s1886_s2 + $0x1a0] sm:$0xff]  ;;  %v342_v54 = vld [vmem:[%s1886_s2 + $0x188] sm:$0xff]  ;;  %508 = vmatprep.subr.mxu1 %v388_v59  ;;  %v383_v1 = vld [vmem:[%s1887_s3 + $0xd0] sm:$0xff] }
  0x27   : > { %440 = vmatpush1.msra.mxu0 %v381_v20  ;;  %v341_v56 = vld [vmem:[%s1886_s2 + $0x180] sm:$0xff]  ;;  %v338_v58 = vld [vmem:[%s1886_s2 + $0x168] sm:$0xff]  ;;  %509 = vmatpush1.msra.mxu1 %v387_v61  ;;  %v380_v3 = vld [vmem:[%s1887_s3 + $0xb8] sm:$0xff] }
  0x28   : > { %441 = vmatprep.subr.mxu0 %v378_v21  ;;  %v337_v60 = vld [vmem:[%s1886_s2 + $0x160] sm:$0xff]  ;;  %v334_v62 = vld [vmem:[%s1886_s2 + $0x148] sm:$0xff]  ;;  %510 = vmatprep.subr.mxu1 %v384_v63  ;;  %v379_v6 = vld [vmem:[%s1887_s3 + $0xb0] sm:$0xff] }
  0x29   : > { %442 = vmatpush1.msra.mxu0 %v377_v22  ;;  %v333_v0 = vld [vmem:[%s1886_s2 + $0x140] sm:$0xff]  ;;  %v330_v2 = vld [vmem:[%s1886_s2 + $0x128] sm:$0xff]  ;;  %511 = vmatpush1.msra.mxu1 %v383_v1  ;;  %v376_v8 = vld [vmem:[%s1887_s3 + $0x98] sm:$0xff] }
  0x2a   : > { %443 = vmatprep.subr.mxu0 %v374_v23  ;;  %v329_v5 = vld [vmem:[%s1886_s2 + $0x120] sm:$0xff]  ;;  %v326_v7 = vld [vmem:[%s1886_s2 + $0x108] sm:$0xff]  ;;  %512 = vmatprep.subr.mxu1 %v380_v3  ;;  %v375_v10 = vld [vmem:[%s1887_s3 + $0x90] sm:$0xff] }
  0x2b   : > { %444 = vmatpush1.msra.mxu0 %v373_v24  ;;  %v325_v9 = vld [vmem:[%s1886_s2 + $0x100] sm:$0xff]  ;;  %v322_v11 = vld [vmem:[%s1886_s2 + $0xe8] sm:$0xff]  ;;  %513 = vmatpush1.msra.mxu1 %v379_v6  ;;  %v372_v12 = vld [vmem:[%s1887_s3 + $0x78] sm:$0xff] }
  0x2c   : > { %445 = vmatprep.subr.mxu0 %v370_v25  ;;  %v321_v13 = vld [vmem:[%s1886_s2 + $0xe0] sm:$0xff]  ;;  %514 = vmatprep.subr.mxu1 %v376_v8  ;;  %v371_v14 = vld [vmem:[%s1887_s3 + $0x70] sm:$0xff]  ;;  %v318_v15 = vld [vmem:[%s1886_s2 + $0xc8] sm:$0xff] }
  0x2d   : > { %446 = vmatpush1.msra.mxu0 %v369_v29  ;;  %515 = vmatpush1.msra.mxu1 %v375_v10  ;;  %v368_v16 = vld [vmem:[%s1887_s3 + $0x58] sm:$0xff]  ;;  %v317_v17 = vld [vmem:[%s1886_s2 + $0xc0] sm:$0xff]  ;;  %v367_v18 = vld [vmem:[%s1887_s3 + $0x50] sm:$0xff] }
  0x2e   : > { %447 = vmatprep.subr.mxu0 %v366_v31  ;;  %516 = vmatprep.subr.mxu1 %v372_v12  ;;  %v314_v19 = vld [vmem:[%s1886_s2 + $0xa8] sm:$0xff]  ;;  %v364_v20 = vld [vmem:[%s1887_s3 + $0x38] sm:$0xff]  ;;  %v313_v21 = vld [vmem:[%s1886_s2 + $0xa0] sm:$0xff] }
  0x2f   : > { %448 = vmatpush1.msra.mxu0 %v365_v33  ;;  %517 = vmatpush1.msra.mxu1 %v371_v14  ;;  %v363_v22 = vld [vmem:[%s1887_s3 + $0x30] sm:$0xff]  ;;  %v310_v23 = vld [vmem:[%s1886_s2 + $0x88] sm:$0xff]  ;;  %v360_v24 = vld [vmem:[%s1887_s3 + $0x18] sm:$0xff] }
  0x30   : > { %449 = vmatprep.subr.mxu0 %v362_v35  ;;  %518 = vmatprep.subr.mxu1 %v368_v16  ;;  %v309_v25 = vld [vmem:[%s1886_s2 + $0x80] sm:$0xff]  ;;  %v359_v26 = vld [vmem:[%s1887_s3 + $0x10] sm:$0xff]  ;;  %v306_v27 = vld [vmem:[%s1886_s2 + $0x68] sm:$0xff] }
  0x31   : > { %450 = vmatpush1.msra.mxu0 %v361_v37  ;;  %519 = vmatpush1.msra.mxu1 %v367_v18  ;;  %v356_v28 = vld [vmem:[%s1886_s2 + $0x1f8] sm:$0xff]  ;;  %v305_v29 = vld [vmem:[%s1886_s2 + $0x60] sm:$0xff]  ;;  %v302_v30 = vld [vmem:[%s1886_s2 + $0x48] sm:$0xff] }
  0x32   : > { %451 = vmatprep.subr.mxu0 %v358_v39  ;;  %520 = vmatprep.subr.mxu1 %v364_v20  ;;  %v355_v31 = vld [vmem:[%s1886_s2 + $0x1f0] sm:$0xff]  ;;  %v301_v32 = vld [vmem:[%s1886_s2 + $0x40] sm:$0xff]  ;;  %v352_v33 = vld [vmem:[%s1886_s2 + $0x1d8] sm:$0xff] }
  0x33   : > { %452 = vmatpush1.msra.mxu0 %v357_v41  ;;  %521 = vmatpush1.msra.mxu1 %v363_v22  ;;  %v298_v34 = vld [vmem:[%s1886_s2 + $0x28] sm:$0xff]  ;;  %v351_v35 = vld [vmem:[%s1886_s2 + $0x1d0] sm:$0xff]  ;;  %v297_v36 = vld [vmem:[%s1886_s2 + $0x20] sm:$0xff] }
  0x34   : > { %486 = vmatmul.mubr.f32.vlgmr.msra.gmra.mxu0 %v1409_v43  ;;  %563 = vmatprep.subr.mxu0 %v354_v44  ;;  %v348_v37 = vld [vmem:[%s1886_s2 + $0x1b8] sm:$0xff]  ;;  %v294_v38 = vld [vmem:[%s1886_s2 + $0x8] sm:$0xff]  ;;  %v347_v39 = vld [vmem:[%s1886_s2 + $0x1b0] sm:$0xff] }
  0x35   : > { %564 = vmatpush1.msra.mxu0 %v353_v45  ;;  %627 = vmatprep.mubr.f32.mxu0 %v1180_v4  ;;  %v293_v40 = vld [vmem:[%s1886_s2] sm:$0xff]  ;;  %v344_v41 = vld [vmem:[%s1886_s2 + $0x198] sm:$0xff]  ;;  %v339_v45 = vld [vmem:[%s1886_s2 + $0x170] sm:$0xff] }
  0x36   : > { %565 = vmatprep.subr.mxu0 %v350_v46  ;;  %522 = vmatprep.subr.mxu1 %v360_v24  ;;  %v291_v42 = vld [vmem:[%s286_s16] sm:$0xff]  ;;  %v340_v44 = vld [vmem:[%s1886_s2 + $0x178] sm:$0xff]  ;;  %v335_v47 = vld [vmem:[%s1886_s2 + $0x150] sm:$0xff]  ;;  %s1122_s16 = sshll.u32 %s1182_s19, 4  ;;  %s1123_s16 = int_to_ptr.vmem [resolvable:$false] %s1122_s16 }
  0x37   : > { %566 = vmatpush1.msra.mxu0 %v349_v48  ;;  %523 = vmatpush1.msra.mxu1 %v359_v26  ;;  %v336_v46 = vld [vmem:[%s1886_s2 + $0x158] sm:$0xff]  ;;  %v331_v49 = vld [vmem:[%s1886_s2 + $0x130] sm:$0xff]  ;;  %v759_v6 = vld [vmem:[%s1889_s5 + $0x168] sm:$0xff]  ;;  %s1124_s20 = scalar_lea.vmem %s1123_s16, 768  ;;  %p1125_p0 = scmp.lt.s32.totalorder %s943_s13, %s1123_s16 }
  0x38   : > { %567 = vmatprep.subr.mxu0 %v346_v50  ;;  %634 = vmatprep.subr.mxu1 %v356_v28  ;;  %v332_v48 = vld [vmem:[%s1886_s2 + $0x138] sm:$0xff]  ;;  %v327_v51 = vld [vmem:[%s1886_s2 + $0x110] sm:$0xff]  ;;  %v758_v10 = vld [vmem:[%s1889_s5 + $0x160] sm:$0xff]  ;;  %p1126_p1 = scmp.lt.s32.totalorder %s1124_s20, %s1118_s18 }
  0x39   : > { %568 = vmatpush1.msra.mxu0 %v345_v52  ;;  %557 = vmatmul.mubr.f32.vlgmr.msra.gmra.mxu1 %v1409_v43  ;;  %v343_v43 = vld [vmem:[%s1886_s2 + $0x190] sm:$0xff]  ;;  %v328_v50 = vld [vmem:[%s1886_s2 + $0x118] sm:$0xff]  ;;  %v755_v12 = vld [vmem:[%s1889_s5 + $0x148] sm:$0xff] }
  0x3a   : > { %569 = vmatprep.subr.mxu0 %v342_v54  ;;  %635 = vmatpush1.msra.mxu1 %v355_v31  ;;  %v324_v52 = vld [vmem:[%s1886_s2 + $0xf8] sm:$0xff]  ;;  %v323_v53 = vld [vmem:[%s1886_s2 + $0xf0] sm:$0xff]  ;;  %v751_v14 = vld [vmem:[%s1889_s5 + $0x128] sm:$0xff]  ;;  %p1127_p2 = por %p1126_p1, %p1125_p0 }
  0x3b   : > { %570 = vmatpush1.msra.mxu0 %v341_v56  ;;  %636 = vmatprep.subr.mxu1 %v352_v33  ;;  %v320_v54 = vld [vmem:[%s1886_s2 + $0xd8] sm:$0xff]  ;;  %v319_v55 = vld [vmem:[%s1886_s2 + $0xd0] sm:$0xff]  ;;  %v750_v16 = vld [vmem:[%s1889_s5 + $0x120] sm:$0xff] }
  0x3c   : > { %571 = vmatprep.subr.mxu0 %v338_v58  ;;  %637 = vmatpush1.msra.mxu1 %v351_v35  ;;  %v316_v56 = vld [vmem:[%s1886_s2 + $0xb8] sm:$0xff]  ;;  %v315_v57 = vld [vmem:[%s1886_s2 + $0xb0] sm:$0xff]  ;;  %v743_v24 = vld [vmem:[%s1889_s5 + $0xe8] sm:$0xff]  ;;  %p1128_p3 = pnand %p1127_p2, %p1121_p13 }
  0x3d   : > { %572 = vmatpush1.msra.mxu0 %v337_v60  ;;  %638 = vmatprep.subr.mxu1 %v348_v37  ;;  %v312_v58 = vld [vmem:[%s1886_s2 + $0x98] sm:$0xff]  ;;  %v311_v59 = vld [vmem:[%s1886_s2 + $0x90] sm:$0xff]  ;;  %v739_v26 = vld [vmem:[%s1889_s5 + $0xc8] sm:$0xff] }
  0x3e   : > { %573 = vmatprep.subr.mxu0 %v334_v62  ;;  %639 = vmatpush1.msra.mxu1 %v347_v39  ;;  %v308_v60 = vld [vmem:[%s1886_s2 + $0x78] sm:$0xff]  ;;  %v307_v61 = vld [vmem:[%s1886_s2 + $0x70] sm:$0xff]  ;;  %v738_v28 = vld [vmem:[%s1889_s5 + $0xc0] sm:$0xff] }
  0x3f   : > { %574 = vmatpush1.msra.mxu0 %v333_v0  ;;  %640 = vmatprep.subr.mxu1 %v344_v41  ;;  %v304_v62 = vld [vmem:[%s1886_s2 + $0x58] sm:$0xff]  ;;  %v303_v63 = vld [vmem:[%s1886_s2 + $0x50] sm:$0xff]  ;;  %v735_v31 = vld [vmem:[%s1889_s5 + $0xa8] sm:$0xff] }
  0x40   : > { %575 = vmatprep.subr.mxu0 %v330_v2  ;;  %641 = vmatpush1.msra.mxu1 %v343_v43  ;;  %v300_v0 = vld [vmem:[%s1886_s2 + $0x38] sm:$0xff]  ;;  %v299_v1 = vld [vmem:[%s1886_s2 + $0x30] sm:$0xff]  ;;  %v734_v33 = vld [vmem:[%s1889_s5 + $0xa0] sm:$0xff] }
  0x41   : > { %576 = vmatpush1.msra.mxu0 %v329_v5  ;;  %642 = vmatprep.subr.mxu1 %v340_v44  ;;  %v296_v2 = vld [vmem:[%s1886_s2 + $0x18] sm:$0xff]  ;;  %v295_v3 = vld [vmem:[%s1886_s2 + $0x10] sm:$0xff]  ;;  %v730_v35 = vld [vmem:[%s1889_s5 + $0x80] sm:$0xff] }
  0x42   : > { %577 = vmatprep.subr.mxu0 %v326_v7  ;;  %698 = vmatprep.mubr.f32.mxu1 %v1180_v4  ;;  %v760_v5 = vld [vmem:[%s1889_s5 + $0x170] sm:$0xff]  ;;  %v761_v7 = vld [vmem:[%s1889_s5 + $0x178] sm:$0xff] }
  0x43   : > { %578 = vmatpush1.msra.mxu0 %v325_v9  ;;  %643 = vmatpush1.msra.mxu1 %v339_v45  ;;  %v757_v8 = vld [vmem:[%s1889_s5 + $0x158] sm:$0xff]  ;;  %v756_v9 = vld [vmem:[%s1889_s5 + $0x150] sm:$0xff] }
  0x44   : > { %579 = vmatprep.subr.mxu0 %v322_v11  ;;  %644 = vmatprep.subr.mxu1 %v336_v46  ;;  %v754_v11 = vld [vmem:[%s1889_s5 + $0x140] sm:$0xff]  ;;  %v749_v18 = vld [vmem:[%s1889_s5 + $0x118] sm:$0xff]  ;;  %v744_v22 = vld [vmem:[%s1889_s5 + $0xf0] sm:$0xff] }
  0x45   : > { %580 = vmatpush1.msra.mxu0 %v321_v13  ;;  %645 = vmatpush1.msra.mxu1 %v335_v47  ;;  %v753_v13 = vld [vmem:[%s1889_s5 + $0x138] sm:$0xff]  ;;  %v728_v39 = vld [vmem:[%s1889_s5 + $0x70] sm:$0xff]  ;;  %v722_v46 = vld [vmem:[%s1889_s5 + $0x40] sm:$0xff] }
  0x46   : > { %581 = vmatprep.subr.mxu0 %v318_v15  ;;  %646 = vmatprep.subr.mxu1 %v332_v48  ;;  %v752_v15 = vld [vmem:[%s1889_s5 + $0x130] sm:$0xff]  ;;  %v745_v20 = vld [vmem:[%s1889_s5 + $0xf8] sm:$0xff]  ;;  %v718_v47 = vld [vmem:[%s1889_s5 + $0x20] sm:$0xff] }
  0x47   : > { %582 = vmatpush1.msra.mxu0 %v317_v17  ;;  %647 = vmatpush1.msra.mxu1 %v331_v49  ;;  %v748_v17 = vld [vmem:[%s1889_s5 + $0x110] sm:$0xff]  ;;  %v729_v37 = vld [vmem:[%s1889_s5 + $0x78] sm:$0xff]  ;;  %v719_v49 = vld [vmem:[%s1889_s5 + $0x28] sm:$0xff] }
  0x48   : > { %583 = vmatprep.subr.mxu0 %v314_v19  ;;  %648 = vmatprep.subr.mxu1 %v328_v50  ;;  %v747_v19 = vld [vmem:[%s1889_s5 + $0x108] sm:$0xff]  ;;  %v724_v41 = vld [vmem:[%s1889_s5 + $0x50] sm:$0xff]  ;;  %v725_v43 = vld [vmem:[%s1889_s5 + $0x58] sm:$0xff] }
  0x49   : > { %584 = vmatpush1.msra.mxu0 %v313_v21  ;;  %649 = vmatpush1.msra.mxu1 %v327_v51  ;;  %v746_v21 = vld [vmem:[%s1889_s5 + $0x100] sm:$0xff]  ;;  %v721_v44 = vld [vmem:[%s1889_s5 + $0x38] sm:$0xff]  ;;  %v720_v45 = vld [vmem:[%s1889_s5 + $0x30] sm:$0xff] }
  0x4a   : > { %585 = vmatprep.subr.mxu0 %v310_v23  ;;  %650 = vmatprep.subr.mxu1 %v324_v52  ;;  %v742_v23 = vld [vmem:[%s1889_s5 + $0xe0] sm:$0xff]  ;;  %v717_v48 = vld [vmem:[%s1889_s5 + $0x18] sm:$0xff]  ;;  %v715_v50 = vld [vmem:[%s1889_s5 + $0x8] sm:$0xff] }
  0x4b   : > { %586 = vmatpush1.msra.mxu0 %v309_v25  ;;  %651 = vmatpush1.msra.mxu1 %v323_v53  ;;  %v741_v25 = vld [vmem:[%s1889_s5 + $0xd8] sm:$0xff]  ;;  %v714_v51 = vld [vmem:[%s1889_s5] sm:$0xff]  ;;  %v716_v52 = vld [vmem:[%s1889_s5 + $0x10] sm:$0xff] }
  0x4c   : > { %587 = vmatprep.subr.mxu0 %v306_v27  ;;  %652 = vmatprep.subr.mxu1 %v320_v54  ;;  %v740_v27 = vld [vmem:[%s1889_s5 + $0xd0] sm:$0xff] }
  0x4d   : > { %588 = vmatpush1.msra.mxu0 %v305_v29  ;;  %653 = vmatpush1.msra.mxu1 %v319_v55  ;;  %v736_v29 = vld [vmem:[%s1889_s5 + $0xb0] sm:$0xff] }
  0x4e   : > { %589 = vmatprep.subr.mxu0 %v302_v30  ;;  %654 = vmatprep.subr.mxu1 %v316_v56  ;;  %v737_v30 = vld [vmem:[%s1889_s5 + $0xb8] sm:$0xff]  ;;  %v1019_v56 = vld [vmem:[%s1888_s4] ss:$0 sm:$0xff] }
  0x4f   : > { %590 = vmatpush1.msra.mxu0 %v301_v32  ;;  %655 = vmatpush1.msra.mxu1 %v315_v57  ;;  %v733_v32 = vld [vmem:[%s1889_s5 + $0x98] sm:$0xff] }
  0x50   : > { %591 = vmatprep.subr.mxu0 %v298_v34  ;;  %656 = vmatprep.subr.mxu1 %v312_v58  ;;  %v732_v34 = vld [vmem:[%s1889_s5 + $0x90] sm:$0xff] }
  0x51   : > { %592 = vmatpush1.msra.mxu0 %v297_v36  ;;  %657 = vmatpush1.msra.mxu1 %v311_v59  ;;  %v731_v36 = vld [vmem:[%s1889_s5 + $0x88] sm:$0xff] }
  0x52   : > { %593 = vmatprep.subr.mxu0 %v294_v38  ;;  %658 = vmatprep.subr.mxu1 %v308_v60  ;;  %v727_v38 = vld [vmem:[%s1889_s5 + $0x68] sm:$0xff] }
  0x53   : > { %594 = vmatpush1.msra.mxu0 %v293_v40  ;;  %659 = vmatpush1.msra.mxu1 %v307_v61  ;;  %v726_v40 = vld [vmem:[%s1889_s5 + $0x60] sm:$0xff]  ;;  %v905_v61 = vlaneseq }
  0x54   : > { %628 = vmatmul.mubr.f32.vlgmr.msra.gmra.mxu0 %v291_v42  ;;  %660 = vmatprep.subr.mxu1 %v304_v62 }
  0x55   : > { %826 = vmatprep.mubr.f32.mxu0 %v1180_v4  ;;  %661 = vmatpush1.msra.mxu1 %v303_v63  ;;  %v906_v63 = vshrl.u32 %v905_v61, 7 }
  0x56   : > { %662 = vmatprep.subr.mxu1 %v300_v0  ;;  %762 = vmatprep.subr.mxu0 %v760_v5  ;;  %v903_v5 = vld [vmem:[%s1890_s6] sm:$0x7] }
  0x57   : > { %663 = vmatpush1.msra.mxu1 %v299_v1  ;;  %763 = vmatpush1.msra.mxu0 %v759_v6  ;;  %v915_v1 = vsub.s32 2, %v906_v63  ;;  %v911_v6 = vsub.s32 1, %v906_v63 }
  0x58   : > { %664 = vmatprep.subr.mxu1 %v296_v2  ;;  %764 = vmatprep.subr.mxu0 %v757_v8 }
  0x59   : > { %665 = vmatpush1.msra.mxu1 %v295_v3  ;;  %765 = vmatpush1.msra.mxu0 %v756_v9 }
  0x5a   : > { %699 = vmatmul.mubr.f32.vlgmr.msra.gmra.mxu1 %v291_v42  ;;  %1040 = vmatprep.subr.mxu1 %v1180_v4  ;;  %v723_v42 = vld [vmem:[%s1889_s5 + $0x48] sm:$0xff] }
  0x5b   : > { %1041 = vmatpush3.msra.mxu1 %v761_v7  ;;  %766 = vmatprep.subr.mxu0 %v754_v11 }
  0x5c   : > { %1042 = vmatprep.subr.mxu1 %v1180_v4  ;;  %767 = vmatpush1.msra.mxu0 %v753_v13 }
  0x5d   : > { %1043 = vmatpush3.msra.mxu1 %v758_v10  ;;  %768 = vmatprep.subr.mxu0 %v751_v14  ;;  %v916_v10 = vrot.slane %v903_v5, %v915_v1 }
  0x5e   : > { %1044 = vmatprep.subr.mxu1 %v1180_v4  ;;  %769 = vmatpush1.msra.mxu0 %v750_v16  ;;  %v912_v16 = vrot.slane %v903_v5, %v911_v6 }
  0x5f   : > { %1045 = vmatpush3.msra.mxu1 %v755_v12  ;;  %770 = vmatprep.subr.mxu0 %v748_v17 }
  0x60   : > { %1046 = vmatprep.subr.mxu1 %v1180_v4  ;;  %771 = vmatpush1.msra.mxu0 %v747_v19 }
  0x61   : > { %1047 = vmatpush3.msra.mxu1 %v752_v15  ;;  %772 = vmatprep.subr.mxu0 %v745_v20 }
  0x62   : > { %1048 = vmatprep.subr.mxu1 %v1180_v4  ;;  %773 = vmatpush1.msra.mxu0 %v744_v22 }
  0x63   : > { %1049 = vmatpush3.msra.mxu1 %v749_v18  ;;  %774 = vmatprep.subr.mxu0 %v742_v23 }
  0x64   : > { %1050 = vmatprep.subr.mxu1 %v1180_v4  ;;  %775 = vmatpush1.msra.mxu0 %v741_v25 }
  0x65   : > { %1051 = vmatpush3.msra.mxu1 %v746_v21  ;;  %776 = vmatprep.subr.mxu0 %v739_v26 }
  0x66   : > { %1052 = vmatprep.subr.mxu1 %v1180_v4  ;;  %777 = vmatpush1.msra.mxu0 %v738_v28 }
  0x67   : > { %1053 = vmatpush3.msra.mxu1 %v743_v24  ;;  %778 = vmatprep.subr.mxu0 %v736_v29 }
  0x68   : > { %1054 = vmatprep.subr.mxu1 %v1180_v4  ;;  %779 = vmatpush1.msra.mxu0 %v735_v31 }
  0x69   : > { %1055 = vmatpush3.msra.mxu1 %v740_v27  ;;  %780 = vmatprep.subr.mxu0 %v733_v32 }
  0x6a   : > { %1056 = vmatprep.subr.mxu1 %v1180_v4  ;;  %781 = vmatpush1.msra.mxu0 %v732_v34 }
  0x6b   : > { %1057 = vmatpush3.msra.mxu1 %v737_v30  ;;  %782 = vmatprep.subr.mxu0 %v730_v35 }
  0x6c   : > { %1058 = vmatprep.subr.mxu1 %v1180_v4  ;;  %783 = vmatpush1.msra.mxu0 %v729_v37 }
  0x6d   : > { %1059 = vmatpush3.msra.mxu1 %v734_v33  ;;  %784 = vmatprep.subr.mxu0 %v727_v38 }
  0x6e   : > { %1060 = vmatprep.subr.mxu1 %v1180_v4  ;;  %785 = vmatpush1.msra.mxu0 %v726_v40 }
  0x6f   : > { %1061 = vmatpush3.msra.mxu1 %v731_v36  ;;  %786 = vmatprep.subr.mxu0 %v724_v41 }
  0x70   : > { %1062 = vmatprep.subr.mxu1 %v1180_v4  ;;  %787 = vmatpush1.msra.mxu0 %v723_v42 }
  0x71   : > { %1063 = vmatpush3.msra.mxu1 %v728_v39  ;;  %788 = vmatprep.subr.mxu0 %v721_v44 }
  0x72   : > { %1064 = vmatprep.subr.mxu1 %v1180_v4  ;;  %789 = vmatpush1.msra.mxu0 %v720_v45 }
  0x73   : > { %1065 = vmatpush3.msra.mxu1 %v725_v43  ;;  %790 = vmatprep.subr.mxu0 %v718_v47 }
  0x74   : > { %1066 = vmatprep.subr.mxu1 %v1180_v4  ;;  %791 = vmatpush1.msra.mxu0 %v717_v48 }
  0x75   : > { %1067 = vmatpush3.msra.mxu1 %v722_v46  ;;  %792 = vmatprep.subr.mxu0 %v715_v50 }
  0x76   : > { %1068 = vmatprep.subr.mxu1 %v1180_v4  ;;  %793 = vmatpush1.msra.mxu0 %v714_v51 }
  0x77   : > { %1069 = vmatpush3.msra.mxu1 %v719_v49  ;;  %1072 = vmatprep.mubr.msk.f32.mxu1 %vm1181_vm0, %v1180_v4 }
  0x78   : > { %1070 = vmatprep.subr.mxu1 %v1180_v4  ;;  %v907_v4 = vsub.s32 0, %v906_v63 }
  0x79   : > { %1071 = vmatpush3.msra.mxu1 %v716_v52 }
  0x7a   : > { %v908_v9 = vrot.slane %v903_v5, %v907_v4 }
  0xf4   : > { %v487_v53 = vpop.f32.mrf.mxu0 }
  0xf6   : > { %v489_v54 = vpop.f32.mrf.mxu0 }
  0xf9   : > { %v558_v60 = vpop.f32.mrf.mxu1 }
  0xfb   : > { %v560_v62 = vpop.f32.mrf.mxu1 }
 0x114   : > { %v629_v55 = vpop.f32.mrf.mxu0 }
 0x115   : > { %v630_v57 = vadd.f32 %v629_v55, %v487_v53 }
 0x116   : > { %v631_v2 = vpop.f32.mrf.mxu0 }
 0x117   : > { %v712_v58 = vadd.f32 %v1019_v56, %v630_v57  ;;  %v632_v7 = vadd.f32 %v631_v2, %v489_v54 }
 0x119   : > { %v713_v59 = vmax.f32 %v712_v58, 0.0 }
 0x11a   : > { %v700_v0 = vpop.f32.mrf.mxu1 }
 0x11b   : > { %827 = vmatmul.mubr.f32.vlgmr.msra.gmra.mxu0 %v713_v59  ;;  %1073 = vmatmul.mubr.f32.vlgmr.msra.gmra.mxu1 %v713_v59  ;;  %v701_v13 = vadd.f32 %v700_v0, %v558_v60 }
 0x11c   : > { %v702_v3 = vpop.f32.mrf.mxu1 }
 0x11d   : > { %v703_v8 = vadd.f32 %v702_v3, %v560_v62 }
 0x1db   : > { %v828_v11 = vpop.f32.mrf.mxu0  ;;  %v899_v12 = vpop.f32.mrf.mxu1 }
 0x1dc   : > { %v829_v14 = vadd.f32 %v828_v11, %v632_v7  ;;  %v900_v15 = vadd.f32 %v899_v12, %v703_v8 }
 0x1dd   : > { %v830_v17 = vpop.f32.mrf.mxu0  ;;  %v1074_v18 = vpop.f32.mrf.mxu1 }
 0x1de   : > { %v920_v19 = vadd.f32 %v908_v9, %v829_v14  ;;  %v922_v20 = vadd.f32 %v916_v10, %v900_v15  ;;  %v831_v21 = vadd.f32 %v830_v17, %v701_v13 }
 0x1e0   : > { %923 = vst [vmem:[%s282_s9] sm:$0xff] %v920_v19  ;;  %926 = vst.msk [vmem:[%s282_s9 + $0x10] sm:$0xff] %vm925_vm1, %v922_v20  ;;  %v921_v22 = vadd.f32 %v912_v16, %v831_v21 }
 0x1e2   : > { %924 = vst [vmem:[%s282_s9 + $0x8] sm:$0xff] %v921_v22 }
 0x1e3   : > { %1131 = shalt.err (!%p1128_p3)
}
 0x1e4   : > { %s1132_s23 = scalar_lea.hbm %s940_s29, 384  ;;  %s1136_s8 = scalar_lea.hbm %s1891_s7, 768 }
 0x1e5   : > { %p1133_p4 = scmp.ne.s32.totalorder %s940_s29, %s1132_s23  ;;  %p1137_p9 = scmp.lt.s32.totalorder %s940_s29, %s1891_s7 }
 0x1e6   : > { %p1138_p10 = scmp.lt.s32.totalorder %s1136_s8, %s1132_s23 }
 0x1e7   : > { %p1134_p7 = pnand %p1133_p4, %p1261_p5 }
 0x1e8   : > { %p1139_p11 = por %p1138_p10, %p1137_p9 }
 0x1e9   : > { %p1135_p8 = pneg %p1134_p7 }
 0x1eb   : > { %p1140_p12 = pnand %p1139_p11, %p1135_p8 }
 0x1ed   : > { %1143 = shalt.err (!%p1140_p12)
}
 0x1ee   : > { %1077 = dma.vmem_to_hbm [thread:$0]  (%p1261_p5), %s943_s13, 384, %s940_s29, %s928_s28  }
 0x1ef PF: > { %p1083_p13 = scmp.ge.s32.totalorder %s1178_s27, 2  ;;  %s954_s14 = sand.u32 1, %s1166_s24  }
 0x1f0   : > { %s955_s15 = scalar_lea.sflag [#allocation3], %s954_s14 }
 0x1f1   : > { %p1080_p0 = pnand %p1083_p13, %p1265_p6 }
 0x1f3   : > { %p1081_p1 = pneg %p1080_p0 }
 0x1f5   : > { %1161 = dma.done.wait (%p1081_p1), %s955_s15, 384  }
 0x1f6   : > { %1163 = vsyncadd (%p1081_p1), %s955_s15, 4294966912  ;;  %p17_p2 = scmp.ge.s32.totalorder %s1248_s30, 4   ;;  %s1894_s24 = smov %s1170_s25 }
 0x1f7   : > { %s1895_s25 = smov %s1174_s26  ;;  %s1896_s26 = smov %s1259_s10 }
 0x1f8   : > { %s1897_s27 = smov %s1248_s30  ;;  %19 = sbr.rel (!%p17_p2) target bundleno = 3 (0x3), region = 86 }
 0x1fd   :  { %960 = vsyncpa [#allocation3], 1 }
 0x1fe   :  { %962 = vsyncpa [#allocation3 + $0x1], 1 }

</bundles_post_ra>
